<compile_context>
chip_gen: v5e
topology: v5e:2x2
jax: 0.10.0
libtpu: 0.0.40
codegen_flags: <defaults>
</compile_context>

<pallas_src>
import jax
import jax.numpy as jnp
from jax.experimental import pallas as pl
from jax.experimental.pallas import tpu as pltpu

KSIZE = 3
DILATION = 2
PAD = DILATION * (KSIZE - 1) // 2   # 'same' padding for dilated 3x3 -> 2

# Single source of truth for the tap order, used by BOTH the im2col layout
# and the weight flattening (addresses the ordering-coupling concern).
_TAPS = tuple((kh, kw) for kh in range(KSIZE) for kw in range(KSIZE))


# ----------------------------- Pallas kernels ------------------------------

def _branch_kernel(xT_ref, w1T_ref, b1_ref, w2T_ref, b2_ref, o_ref):
    # xT_ref : (9*Cin, Bblk*HW)  im2col patches, pixels on the lane axis (bf16)
    # w1T_ref: (Cmid, 9*Cin)     fused dilated-conv weights, transposed (bf16)
    # b1_ref : (Cmid, 1)         f32
    # w2T_ref: (Ncls, Cmid)      1x1 conv weights, transposed (bf16)
    # b2_ref : (Ncls, 1)         f32
    # o_ref  : (Ncls, Bblk*HW)   lane-dense output (pixels on the lane axis)
    h = jnp.dot(w1T_ref[...], xT_ref[...],
                preferred_element_type=jnp.float32)            # (Cmid, Bblk*HW)
    h = jnp.maximum(h + b1_ref[...], 0.0)                      # f32 bias + ReLU
    y = jnp.dot(w2T_ref[...], h.astype(w2T_ref.dtype),
                preferred_element_type=jnp.float32)            # (Ncls, Bblk*HW)
    o_ref[...] = (y + b2_ref[...]).astype(o_ref.dtype)


def _pooled_branch_kernel(x_ref, w1c_ref, b1_ref, w2_ref, b2_ref, o_ref):
    # avg_pool=True path: adaptive_avg_pool2d -> (1,1); a dilated 3x3 'same'
    # conv on a 1x1 image only sees the centre tap (every other tap lands on
    # the zero padding, since PAD == DILATION*(KSIZE-1)//2), so the whole
    # branch reduces to a 2-layer MLP on the pooled means.
    # x_ref  : (B, H*W, C)   whole stacked batch in one block
    # w1c_ref: (C, Cmid)     centre tap w1[1, 1]
    # o_ref  : (B, Ncls)
    pooled = jnp.mean(x_ref[...].astype(jnp.float32), axis=1)          # (B, C)
    h = jnp.maximum(
        jnp.dot(pooled, w1c_ref[...], preferred_element_type=jnp.float32)
        + b1_ref[...], 0.0)                                            # (B, Cmid)
    y = jnp.dot(h, w2_ref[...], preferred_element_type=jnp.float32) + b2_ref[...]
    o_ref[...] = y.astype(o_ref.dtype)                                 # (B, Ncls)


# ------------------------------ Wrappers ------------------------------------

def dilated_branch(x_nhwc, params, compute_dtype=jnp.bfloat16):
    """Fused dilated-conv branch over the whole stacked batch (1-2 grid steps)."""
    w1, b1, w2, b2 = params
    B, H, W, C = x_nhwc.shape
    Cmid = w1.shape[-1]
    Ncls = w2.shape[-1]
    HW = H * W
    K9C = KSIZE * KSIZE * C

    # Layout plumbing (wrapper-side, pure glue): 'same' zero-pad + im2col,
    # transposed so pixels (b*HW + h*W + w) ride the lane axis end-to-end.
    xpad = jnp.pad(x_nhwc, ((0, 0), (PAD, PAD), (PAD, PAD), (0, 0)))
    taps = [xpad[:, kh * DILATION:kh * DILATION + H,
                 kw * DILATION:kw * DILATION + W, :]
            for kh, kw in _TAPS]
    x_col = jnp.concatenate(taps, axis=-1).reshape(B * HW, K9C)
    x_colT = x_col.T.astype(compute_dtype)                     # (9C, B*HW)

    # Weight flattening uses the SAME _TAPS order as the im2col concat.
    w1f = jnp.concatenate([w1[kh, kw] for kh, kw in _TAPS], axis=0)  # (9C, Cmid)
    w1T = w1f.T.astype(compute_dtype)                          # (Cmid, 9C)
    w2T = w2.T.astype(compute_dtype)                           # (Ncls, Cmid)
    b1c = b1.reshape(Cmid, 1).astype(jnp.float32)
    b2c = b2.reshape(Ncls, 1).astype(jnp.float32)

    # 2 equal macro-steps when B splits evenly (keeps both v7x TCs busy with
    # near-zero extra overhead on 1-TC v5e/v6e); otherwise a single step.
    nsteps = 2 if (B % 2 == 0 and B >= 2) else 1
    cols = (B // nsteps) * HW

    out = pl.pallas_call(
        _branch_kernel,
        out_shape=jax.ShapeDtypeStruct((Ncls, B * HW), jnp.float32),
        grid=(nsteps,),
        in_specs=[
            pl.BlockSpec((K9C, cols), lambda i: (0, i)),
            pl.BlockSpec((Cmid, K9C), lambda i: (0, 0)),
            pl.BlockSpec((Cmid, 1), lambda i: (0, 0)),
            pl.BlockSpec((Ncls, Cmid), lambda i: (0, 0)),
            pl.BlockSpec((Ncls, 1), lambda i: (0, 0)),
        ],
        out_specs=pl.BlockSpec((Ncls, cols), lambda i: (0, i)),
        compiler_params=pltpu.CompilerParams(dimension_semantics=("parallel",)),
    )(x_colT, w1T, b1c, w2T, b2c)

    # Cheap relayout of a tiny (Ncls, B*HW) result back to NCHW.
    return jnp.transpose(out.reshape(Ncls, B, H, W), (1, 0, 2, 3))


def pooled_branch(x_nhwc, params):
    """avg_pool=True path: fused adaptive_avg_pool2d(1,1) + centre-tap MLP,
    whole stacked batch in a single launch (no grid)."""
    w1, b1, w2, b2 = params
    B, H, W, C = x_nhwc.shape
    Cmid = w1.shape[-1]
    Ncls = w2.shape[-1]
    w1c = w1[KSIZE // 2, KSIZE // 2]                     # (C, Cmid) centre tap
    x_flat = x_nhwc.reshape(B, H * W, C)                 # free reshape

    out = pl.pallas_call(
        _pooled_branch_kernel,
        out_shape=jax.ShapeDtypeStruct((B, Ncls), jnp.float32),
    )(x_flat, w1c.astype(jnp.float32), b1.astype(jnp.float32),
      w2.astype(jnp.float32), b2.astype(jnp.float32))

    return out.reshape(B, Ncls, 1, 1)


def siamese_forward(data, n_branches, params, avg_pool=False):
    """Mirrors SiameseDilatedNetAPN.forward.

    data: (n_branches, N, C, H, W) float32 (PyTorch NCHW per branch).
    Returns: list of length n_branches, each (N, n_classes, H', W') NCHW.
    """
    nb, N, C, H, W = data.shape
    assert nb == n_branches
    # Weights are shared (Siamese): fold branches + batch into one call.
    x = data.reshape(nb * N, C, H, W)
    x = jnp.transpose(x, (0, 2, 3, 1))                   # single NCHW -> NHWC
    if avg_pool:
        y = pooled_branch(x, params)                     # (B, Ncls, 1, 1)
    else:
        y = dilated_branch(x, params)                    # (B, Ncls, H, W)
    y = y.reshape(nb, N, *y.shape[1:])
    return [y[i] for i in range(nb)]


_siamese_forward_jit = jax.jit(siamese_forward, static_argnums=(1, 3))


# ----------------------- deterministic parameter init -----------------------

def init_params(key, cin, cmid, ncls):
    k1, k2, k3, k4 = jax.random.split(key, 4)
    w1 = 0.1 * jax.random.normal(k1, (KSIZE, KSIZE, cin, cmid), jnp.float32)
    b1 = 0.1 * jax.random.normal(k2, (1, cmid), jnp.float32)
    w2 = 0.1 * jax.random.normal(k3, (cmid, ncls), jnp.float32)
    b2 = 0.1 * jax.random.normal(k4, (1, ncls), jnp.float32)
    return w1, b1, w2, b2


# ---------------------------- pure-JAX reference -----------------------------

def reference_branch(x_nhwc, params, compute_dtype=jnp.bfloat16):
    """Reference with the same operand dtype as the kernel (f32 accumulation)."""
    w1, b1, w2, b2 = params
    n, h, w, c = x_nhwc.shape
    xpad = jnp.pad(x_nhwc, ((0, 0), (PAD, PAD), (PAD, PAD), (0, 0)))
    acc = jnp.zeros((n, h, w, w1.shape[-1]), jnp.float32)
    for kh, kw in _TAPS:
        patch = xpad[:, kh * DILATION:kh * DILATION + h,
                     kw * DILATION:kw * DILATION + w, :]
        acc = acc + jnp.einsum('nhwc,cd->nhwd',
                               patch.astype(compute_dtype),
                               w1[kh, kw].astype(compute_dtype),
                               preferred_element_type=jnp.float32)
    hidden = jnp.maximum(acc + b1.reshape(1, 1, 1, -1), 0.0)
    y = jnp.einsum('nhwd,de->nhwe',
                   hidden.astype(compute_dtype), w2.astype(compute_dtype),
                   preferred_element_type=jnp.float32)
    return y + b2.reshape(1, 1, 1, -1)


# ---------------------------------- main -------------------------------------

if __name__ == "__main__":
    key = jax.random.PRNGKey(0)
    k_data, k_params = jax.random.split(key)

    n_branches, N, C, H, W = 2, 2, 4, 16, 16
    CMID, NCLS = 8, 3

    data = jax.random.normal(k_data, (n_branches, N, C, H, W), jnp.float32)
    params = init_params(k_params, C, CMID, NCLS)

    # avg_pool=False path (training-style forward)
    out = _siamese_forward_jit(data, n_branches, params, False)
    out = [jax.block_until_ready(o) for o in out]
    for i in range(n_branches):
        x_nhwc = jnp.transpose(data[i], (0, 2, 3, 1))
        ref = jnp.transpose(reference_branch(x_nhwc, params), (0, 3, 1, 2))
        assert out[i].shape == (N, NCLS, H, W)
        assert jnp.allclose(out[i], ref, atol=1e-3, rtol=1e-3), \
            float(jnp.max(jnp.abs(out[i] - ref)))

    # avg_pool=True path (adaptive_avg_pool2d -> (1,1) before the branch)
    out_pool = _siamese_forward_jit(data, n_branches, params, True)
    out_pool = [jax.block_until_ready(o) for o in out_pool]
    for i in range(n_branches):
        x_nhwc = jnp.transpose(data[i], (0, 2, 3, 1))
        pooled = jnp.mean(x_nhwc, axis=(1, 2), keepdims=True)
        ref = jnp.transpose(
            reference_branch(pooled, params, compute_dtype=jnp.float32),
            (0, 3, 1, 2))
        assert out_pool[i].shape == (N, NCLS, 1, 1)
        assert jnp.allclose(out_pool[i], ref, atol=1e-4, rtol=1e-4)

    print("KERNEL_OK")
</pallas_src>

<mosaic_0001>
module attributes {stable_mosaic.version = 11 : i64} {
  func.func @_branch_kernel(%arg0: i32, %arg1: memref<36x512xbf16, #tpu.memory_space<vmem>>, %arg2: memref<8x36xbf16, #tpu.memory_space<vmem>>, %arg3: memref<8x1xf32, #tpu.memory_space<vmem>>, %arg4: memref<3x8xbf16, #tpu.memory_space<vmem>>, %arg5: memref<3x1xf32, #tpu.memory_space<vmem>>, %arg6: memref<3x512xf32, #tpu.memory_space<vmem>>) attributes {dimension_semantics = [#tpu.dimension_semantics<parallel>], iteration_bounds = array<i64: 2>, scalar_prefetch = 0 : i64, scratch_operands = 0 : i64, tpu.core_type = #tpu.core_type<tc>, window_params = [{transform_indices = @transform_0, window_bounds = array<i64: 36, 512>}, {pipeline_mode = #tpu.pipeline_mode<synchronous>, transform_indices = @transform_1, window_bounds = array<i64: 8, 36>}, {pipeline_mode = #tpu.pipeline_mode<synchronous>, transform_indices = @transform_2, window_bounds = array<i64: 8, 1>}, {pipeline_mode = #tpu.pipeline_mode<synchronous>, transform_indices = @transform_3, window_bounds = array<i64: 3, 8>}, {pipeline_mode = #tpu.pipeline_mode<synchronous>, transform_indices = @transform_4, window_bounds = array<i64: 3, 1>}, {transform_indices = @transform_5, window_bounds = array<i64: 3, 512>}]} {
    %c0 = arith.constant 0 : index
    %c0_0 = arith.constant 0 : index
    %0 = vector.load %arg2[%c0, %c0_0] : memref<8x36xbf16, #tpu.memory_space<vmem>>, vector<8x36xbf16>
    %c0_1 = arith.constant 0 : index
    %c0_2 = arith.constant 0 : index
    %1 = vector.load %arg1[%c0_1, %c0_2] : memref<36x512xbf16, #tpu.memory_space<vmem>>, vector<36x512xbf16>
    %cst = arith.constant dense<0.000000e+00> : vector<8x512xf32>
    %2 = tpu.matmul %0, %1, %cst {dimension_numbers = #tpu.dot_dimension_numbers<[1], [0], [0], [1], [0, 0, 1, 1], [], []>} : vector<8x36xbf16>, vector<36x512xbf16>, vector<8x512xf32> -> vector<8x512xf32>
    %c0_3 = arith.constant 0 : index
    %c0_4 = arith.constant 0 : index
    %3 = vector.load %arg3[%c0_3, %c0_4] : memref<8x1xf32, #tpu.memory_space<vmem>>, vector<8x1xf32>
    %4 = vector.broadcast %3 : vector<8x1xf32> to vector<8x512xf32>
    %5 = arith.addf %2, %4 : vector<8x512xf32>
    %cst_5 = arith.constant 0.000000e+00 : f32
    %6 = vector.broadcast %cst_5 : f32 to vector<8x512xf32>
    %7 = arith.maximumf %5, %6 : vector<8x512xf32>
    %c0_6 = arith.constant 0 : index
    %c0_7 = arith.constant 0 : index
    %8 = vector.load %arg4[%c0_6, %c0_7] : memref<3x8xbf16, #tpu.memory_space<vmem>>, vector<3x8xbf16>
    %9 = arith.truncf %7 : vector<8x512xf32> to vector<8x512xbf16>
    %cst_8 = arith.constant dense<0.000000e+00> : vector<3x512xf32>
    %10 = tpu.matmul %8, %9, %cst_8 {dimension_numbers = #tpu.dot_dimension_numbers<[1], [0], [0], [1], [0, 0, 1, 1], [], []>} : vector<3x8xbf16>, vector<8x512xbf16>, vector<3x512xf32> -> vector<3x512xf32>
    %c0_9 = arith.constant 0 : index
    %c0_10 = arith.constant 0 : index
    %11 = vector.load %arg5[%c0_9, %c0_10] : memref<3x1xf32, #tpu.memory_space<vmem>>, vector<3x1xf32>
    %12 = vector.broadcast %11 : vector<3x1xf32> to vector<3x512xf32>
    %13 = arith.addf %10, %12 : vector<3x512xf32>
    %c0_11 = arith.constant 0 : index
    %c0_12 = arith.constant 0 : index
    %14 = vector.load %arg6[%c0_11, %c0_12] : memref<3x512xf32, #tpu.memory_space<vmem>>, vector<3x512xf32>
    tpu.vector_store %arg6[%c0_11, %c0_12], %13 {strides = array<i32>} : memref<3x512xf32, #tpu.memory_space<vmem>>, vector<3x512xf32>,
    return
  }
  func.func @transform_0(%arg0: i32) -> (i32, i32) {
    %c0_i32 = arith.constant 0 : i32
    %c0_i32_0 = arith.constant 0 : i32
    return %c0_i32, %arg0 : i32, i32
  }
  func.func @transform_1(%arg0: i32) -> (i32, i32) {
    %c0_i32 = arith.constant 0 : i32
    %c0_i32_0 = arith.constant 0 : i32
    %c0_i32_1 = arith.constant 0 : i32
    return %c0_i32, %c0_i32_0 : i32, i32
  }
  func.func @transform_2(%arg0: i32) -> (i32, i32) {
    %c0_i32 = arith.constant 0 : i32
    %c0_i32_0 = arith.constant 0 : i32
    %c0_i32_1 = arith.constant 0 : i32
    return %c0_i32, %c0_i32_0 : i32, i32
  }
  func.func @transform_3(%arg0: i32) -> (i32, i32) {
    %c0_i32 = arith.constant 0 : i32
    %c0_i32_0 = arith.constant 0 : i32
    %c0_i32_1 = arith.constant 0 : i32
    return %c0_i32, %c0_i32_0 : i32, i32
  }
  func.func @transform_4(%arg0: i32) -> (i32, i32) {
    %c0_i32 = arith.constant 0 : i32
    %c0_i32_0 = arith.constant 0 : i32
    %c0_i32_1 = arith.constant 0 : i32
    return %c0_i32, %c0_i32_0 : i32, i32
  }
  func.func @transform_5(%arg0: i32) -> (i32, i32) {
    %c0_i32 = arith.constant 0 : i32
    %c0_i32_0 = arith.constant 0 : i32
    return %c0_i32, %arg0 : i32, i32
  }
}

</mosaic_0001>

<bundles_post_ra>
// kernel: siamese_forward.1
= control target key start
LH: loop header
LB: loop body
LE: loop exit
PB: predicated region body
PF: predicated region fallthrough
CT: control target
= control target key end

     0   :  { %s703_s18 = smov 0   ;;  %s705_s19 = smov 0   ;;  %s801_s0 = inlined_call_operand.vmem [shape: bf16[36,1024], index: 0, kind: input, shape index: {}]   ;;  %s802_s1 = inlined_call_operand.vmem [shape: bf16[8,36], index: 1, kind: input, shape index: {}]   ;;  %s803_s2 = inlined_call_operand.vmem [shape: f32[8,1], index: 2, kind: input, shape index: {}]   ;;  %s804_s3 = inlined_call_operand.vmem [shape: bf16[3,8], index: 3, kind: input, shape index: {}]   ;;  %s805_s4 = inlined_call_operand.vmem [shape: f32[3,1], index: 4, kind: input, shape index: {}]   ;;  %s806_s5 = inlined_call_operand.vmem [shape: f32[3,1024], index: 5, kind: output, shape index: {}]  }
   0x1   :  { %s707_s20 = smov 0  }
   0x2 LB: > { %s560_s21 = sadd.s32 4294967295, %s670_s20   ;;  %s720_s22 = sadd.s32 1, %s670_s20   ;;  %s670_s20 = sphi %s707_s20, %s809_s20   ;;  %s666_s19 = sphi %s705_s19, %s808_s19   ;;  %s662_s18 = sphi %s703_s18, %s807_s18  }
   0x3   : > { %s19_s23 = ssub.s32 %s670_s20, %s720_s22  ;;  %s22_s24 = sadd.s32 1, %s666_s19 }
   0x4   : > { %p20_p0 = scmp.eq.s32.totalorder %s19_s23, 0  ;;  %p29_p1 = scmp.ne.s32.totalorder %s666_s19, %s662_s18 }
   0x5   : > { %p30_p2 = scmp.eq.s32.totalorder %s670_s20, 0  ;;  %p563_p4 = scmp.ge.s32.totalorder %s670_s20, 2 }
   0x6   : > { %s729_s25 = scalar_select %p20_p0, %s666_s19, %s22_s24  }
   0x7   : > { %p31_p3 = por %p30_p2, %p29_p1  ;;  %177 = sbr.rel (%p563_p4) target bundleno = 26 (0x1a), region = 32 }
   0xc   : > { %180 = sbr.rel (!%p31_p3) target bundleno = 26 (0x1a), region = 36  ;;  %s182_s26 = sand.u32 (%p31_p3), 1, %s666_s19  }
   0xd   : > { %s611_s27 = sshll.u32 (%p31_p3), %s670_s20, 4  ;;  %s620_s28 = smul.u32 (%p31_p3), 80, %s182_s26 }
   0xe   : > { %s187_s6 = scalar_lea.vmem (%p31_p3), %s801_s0, %s611_s27 }
   0xf   : > { %v200_v0 = vld [vmem:[%s187_s6] sm:$0xff] (%p31_p3)  ;;  %v202_v1 = vld [vmem:[%s187_s6 + $0x8] sm:$0xff] (%p31_p3)  ;;  %s184_s7 = scalar_lea.vmem (%p31_p3), [#allocation2], %s620_s28 }
  0x10   : > { %v204_v2 = vld [vmem:[%s187_s6 + $0x20] sm:$0xff] (%p31_p3)  ;;  %201 = vst [vmem:[%s184_s7] sm:$0xff] (%p31_p3), %v200_v0  ;;  %v206_v3 = vld [vmem:[%s187_s6 + $0x28] sm:$0xff] (%p31_p3) }
  0x11   : > { %203 = vst [vmem:[%s184_s7 + $0x8] sm:$0xff] %v202_v1  ;;  %v208_v4 = vld [vmem:[%s187_s6 + $0x40] sm:$0xff]  ;;  %v210_v5 = vld [vmem:[%s187_s6 + $0x48] sm:$0xff] }
  0x12   : > { %205 = vst [vmem:[%s184_s7 + $0x10] sm:$0xff] %v204_v2  ;;  %v212_v6 = vld [vmem:[%s187_s6 + $0x60] sm:$0xff]  ;;  %v214_v7 = vld [vmem:[%s187_s6 + $0x68] sm:$0xff] }
  0x13   : > { %207 = vst [vmem:[%s184_s7 + $0x18] sm:$0xff] %v206_v3  ;;  %v216_v8 = vld [vmem:[%s187_s6 + $0x80] sm:$0xff]  ;;  %v218_v9 = vld [vmem:[%s187_s6 + $0x88] sm:$0xff] }
  0x14   : > { %209 = vst [vmem:[%s184_s7 + $0x20] sm:$0xff] %v208_v4 }
  0x15   : > { %211 = vst [vmem:[%s184_s7 + $0x28] sm:$0xff] %v210_v5 }
  0x16   : > { %213 = vst [vmem:[%s184_s7 + $0x30] sm:$0xff] %v212_v6 }
  0x17   : > { %215 = vst [vmem:[%s184_s7 + $0x38] sm:$0xff] %v214_v7 }
  0x18   : > { %217 = vst [vmem:[%s184_s7 + $0x40] sm:$0xff] %v216_v8 }
  0x19   : > { %219 = vst [vmem:[%s184_s7 + $0x48] sm:$0xff] %v218_v9 }
  0x1a PF: > { %p566_p5 = scmp.ge.s32.totalorder %s670_s20, 1  ;;  %p224_p6 = scmp.lt.s32.totalorder %s670_s20, 3 }
  0x1c   : > { %p225_p7 = pnand %p566_p5, %p224_p6 }
  0x1d   : > { %s231_s8 = sand.u32 (!%p225_p7), 1, %s662_s18   ;;  %s567_s23 = sshll.u32 (!%p225_p7), %s560_s21, 2 }
  0x1e   : > { %228 = sbr.rel (%p225_p7) target bundleno = 336 (0x150), region = 59  ;;  %p260_p8 = scmp.lt.s32.totalorder (!%p225_p7), %s567_s23, 7 }
  0x1f   : > { %s621_s9 = smul.u32 (!%p225_p7), 80, %s231_s8 }
  0x21   : > { %s743_s12 = scalar_lea.vmem (!%p225_p7), [#allocation2], %s621_s9 }
  0x23   : > { %v672_v10 = vmov 0   ;;  %v277_v11 = vld [vmem:[%s803_s2] sm:$0xff]  ;;  %v276_v13 = vld [vmem:[%s743_s12 + $0x48] sm:$0x33]  ;;  %vm337_vm0 = vcmask 1041408   ;;  %vm333_vm1 = vcmask 293888  }
  0x24   : > { %647 = vset.pattern.permute.xlu0 %v672_v10  ;;  %v275_v12 = vld [vmem:[%s743_s12 + $0x40] sm:$0x33]  ;;  %v311_v16 = vunpack.c.l.b16 %v276_v13  ;;  %v312_v17 = vunpack.c.h.b16 %v276_v13  ;;  %v618_v19 = vld [vmem:[%s743_s12 + $0x2c] sm:$0xf0]  ;;  %v589_v25 = vld [vmem:[%s743_s12 + $0x30] sm:$0xf0] }
  0x25   : > { %280 = vperm.xlu0 %647, %v277_v11   ;;  %v309_v14 = vunpack.c.l.b16 %v275_v12  ;;  %v310_v15 = vunpack.c.h.b16 %v275_v12  ;;  %v587_v18 = vld [vmem:[%s743_s12 + $0x20] sm:$0xf]  ;;  %v616_v24 = vld [vmem:[%s743_s12 + $0x24] sm:$0xf]  ;;  %v595_v26 = vld [vmem:[%s743_s12 + $0x28] sm:$0xf] }
  0x26   : > { %v323_v22 = vpack.c.b16 %v311_v16, %v311_v16  ;;  %v324_v23 = vpack.c.b16 %v312_v17, %v312_v17  ;;  %v619_v27 = vld [vmem:[%s743_s12 + $0x34] sm:$0xf0]  ;;  %v617_v28 = vld [vmem:[%s743_s12 + $0x2c] sm:$0xf]  ;;  %v597_v29 = vld [vmem:[%s743_s12 + $0x38] sm:$0xf0]  ;;  %v588_v35 = vor.u32 %v618_v19, %v587_v18  ;;  %v592_v36 = vor.u32 %v616_v24, %v589_v25 }
  0x27   : > { %v321_v20 = vpack.c.b16 %v309_v14, %v309_v14  ;;  %v322_v21 = vpack.c.b16 %v310_v15, %v310_v15  ;;  %v411_v34 = vld [vmem:[%s805_s4] sm:$0x7]  ;;  %v596_v39 = vor.u32 %v619_v27, %v595_v26  ;;  %v600_v40 = vor.u32 %v617_v28, %v597_v29  ;;  %v612_v41 = vld [vmem:[%s743_s12 + $0x4] sm:$0xf]  ;;  %v573_v42 = vld [vmem:[%s743_s12 + $0x10] sm:$0xf0] }
  0x28   : > { %v345_v32 = vsel %vm337_vm0, %v323_v22, 0  ;;  %v348_v33 = vsel %vm337_vm0, %v324_v23, 0  ;;  %v571_v37 = vld [vmem:[%s743_s12] sm:$0xf]  ;;  %v614_v38 = vld [vmem:[%s743_s12 + $0xc] sm:$0xf0]  ;;  %v576_v48 = vor.u32 %v612_v41, %v573_v42 }
  0x29   : > { %v339_v30 = vsel %vm337_vm0, %v321_v20, 0  ;;  %v342_v31 = vsel %vm337_vm0, %v322_v21, 0  ;;  %381 = vmatpush.bf16.msra.mxu2 %v345_v32  ;;  %394 = vmatpush.bf16.msra.mxu3 %v348_v33  ;;  %v579_v43 = vld [vmem:[%s743_s12 + $0x8] sm:$0xf]  ;;  %v615_v44 = vld [vmem:[%s743_s12 + $0x14] sm:$0xf0]  ;;  %v572_v47 = vor.u32 %v614_v38, %v571_v37 }
  0x2a   : > { %355 = vmatpush.bf16.msra.mxu0 %v339_v30  ;;  %368 = vmatpush.bf16.msra.mxu1 %v342_v31  ;;  %v613_v45 = vld [vmem:[%s743_s12 + $0xc] sm:$0xf]  ;;  %v581_v46 = vld [vmem:[%s743_s12 + $0x18] sm:$0xf0]  ;;  %v580_v49 = vor.u32 %v615_v44, %v579_v43  ;;  %v266_v51 = vld [vmem:[%s802_s1] sm:$0xf] }
  0x2b   : > { %v584_v50 = vor.u32 %v613_v45, %v581_v46  ;;  %vm421_vm2 = vcmask 1043456   ;;  %v406_v3 = vld [vmem:[%s804_s3] sm:$0x3]  ;;  %vm417_vm3 = vcmask 64512   ;;  %s811_s23 = smov (!%p260_p8, %s567_s23), 7 }
  0x2c   : > { %s568_s24 = sshll.u32 %s811_s23, 2 }
  0x2d   : > { %414 = vperm.xlu0 %647, %v411_v34   ;;  %382 = vmatpush.bf16.msra.mxu2 %v596_v39  ;;  %s263_s28 = scalar_lea.vmem %s806_s5, %s568_s24 }
  0x2e   : > { %356 = vmatpush.bf16.msra.mxu0 %v588_v35  ;;  %369 = vmatpush.bf16.msra.mxu1 %v592_v36 }
  0x2f   : > { %395 = vmatpush.bf16.msra.mxu3 %v600_v40 }
  0x31   : > { %383 = vmatpush.bf16.msra.mxu2 %v580_v49 }
  0x32   : > { %357 = vmatpush.bf16.msra.mxu0 %v572_v47  ;;  %370 = vmatpush.bf16.msra.mxu1 %v576_v48 }
  0x33   : > { %396 = vmatpush.bf16.msra.mxu3 %v584_v50 }
  0x34   : > { %603 = vmatmul.msk.bf16.vlgmr.msra.gmra.mxu2 %vm333_vm1, %v266_v51 }
  0x35   : > { %601 = vmatmul.msk.bf16.vlgmr.msra.gmra.mxu0 %vm333_vm1, %v266_v51  ;;  %602 = vmatmul.msk.bf16.vlgmr.msra.gmra.mxu1 %vm333_vm1, %v266_v51 }
  0x36   : > { %604 = vmatmul.msk.bf16.vlgmr.msra.gmra.mxu3 %vm333_vm1, %v266_v51 }
  0x97   : > { %v281_v52 = vpop.permute.xlu0 %280 }
  0x9f   : > { %v415_v14 = vpop.permute.xlu0 %414 }
  0xb2   : > { %v359_v53 = vpop.f32.mrf.mxu0  ;;  %v372_v54 = vpop.f32.mrf.mxu1 }
  0xb3   : > { %v360_v55 = vadd.f32 %v359_v53, %v281_v52  ;;  %v373_v56 = vadd.f32 %v372_v54, %v281_v52 }
  0xb5   : > { %v402_v57 = vmax.f32 %v360_v55, 0.0  ;;  %v403_v58 = vmax.f32 %v373_v56, 0.0 }
  0xb7   : > { %v407_v59 = vpack.c.bf16 %v402_v57, %v402_v57  ;;  %v408_v60 = vpack.c.bf16 %v403_v58, %v403_v58  ;;  %v385_v61 = vpop.f32.mrf.mxu2 }
  0xb8   : > { %v386_v1 = vadd.f32 %v385_v61, %v281_v52 }
  0xb9   : > { %v398_v62 = vpop.f32.mrf.mxu3  ;;  %v423_v63 = vsel %vm421_vm2, %v407_v59, 0  ;;  %v426_v0 = vsel %vm421_vm2, %v408_v60, 0 }
  0xba   : > { %v399_v2 = vadd.f32 %v398_v62, %v281_v52  ;;  %441 = vmatpush.bf16.msrb.mxu0 %v423_v63  ;;  %454 = vmatpush.bf16.msrb.mxu1 %v426_v0  ;;  %v361_v4 = vpop.f32.mrf.mxu0  ;;  %v374_v5 = vpop.f32.mrf.mxu1  ;;  %v404_v6 = vmax.f32 %v386_v1, 0.0 }
  0xbc   : > { %v405_v7 = vmax.f32 %v399_v2, 0.0  ;;  %v409_v8 = vpack.c.bf16 %v404_v6, %v404_v6 }
  0xbd   : > { %605 = vmatmul.msk.bf16.vlgmr.msrb.gmra.mxu0 %vm417_vm3, %v406_v3  ;;  %606 = vmatmul.msk.bf16.vlgmr.msrb.gmra.mxu1 %vm417_vm3, %v406_v3 }
  0xbe   : > { %v410_v9 = vpack.c.bf16 %v405_v7, %v405_v7  ;;  %v429_v10 = vsel %vm421_vm2, %v409_v8, 0 }
  0xbf   : > { %v387_v12 = vpop.f32.mrf.mxu2  ;;  %467 = vmatpush.bf16.msrb.mxu2 %v429_v10 }
  0xc0   : > { %v432_v11 = vsel %vm421_vm2, %v410_v9, 0 }
  0xc1   : > { %v400_v13 = vpop.f32.mrf.mxu3  ;;  %480 = vmatpush.bf16.msrb.mxu3 %v432_v11 }
  0xc2   : > { %607 = vmatmul.msk.bf16.vlgmr.msrb.gmra.mxu2 %vm417_vm3, %v406_v3 }
  0xc4   : > { %608 = vmatmul.msk.bf16.vlgmr.msrb.gmra.mxu3 %vm417_vm3, %v406_v3 }
 0x13a   : > { %v443_v15 = vpop.f32.mrf.mxu0  ;;  %v456_v16 = vpop.f32.mrf.mxu1 }
 0x13b   : > { %v457_v17 = vadd.f32 %v456_v16, %v415_v14  ;;  %v444_v18 = vadd.f32 %v443_v15, %v415_v14 }
 0x13d   : > { %v490_v19 = vrot.slane %v457_v17, 4 }
 0x13f   : > { %v492_v20 = vsel %vm421_vm2, %v444_v18, %v490_v19 }
 0x140   : > { %496 = vst [vmem:[%s263_s28] sm:$0x77] %v492_v20 }
 0x142   : > { %v445_v21 = vpop.f32.mrf.mxu0  ;;  %v458_v22 = vpop.f32.mrf.mxu1 }
 0x145   : > { %v469_v23 = vpop.f32.mrf.mxu2 }
 0x146   : > { %v470_v26 = vadd.f32 %v469_v23, %v415_v14 }
 0x147   : > { %v482_v24 = vpop.f32.mrf.mxu3 }
 0x148   : > { %v483_v25 = vadd.f32 %v482_v24, %v415_v14 }
 0x14a   : > { %v491_v27 = vrot.slane %v483_v25, 4 }
 0x14c   : > { %v493_v28 = vsel %vm421_vm2, %v470_v26, %v491_v27 }
 0x14d   : > { %497 = vst [vmem:[%s263_s28 + $0x8] sm:$0x77] %v493_v28  ;;  %v471_v29 = vpop.f32.mrf.mxu2 }
 0x14f   : > { %v484_v30 = vpop.f32.mrf.mxu3 }
 0x150 PF: > { %p12_p9 = scmp.ge.s32.totalorder %s720_s22, 4   ;;  %s807_s18 = smov %s666_s19 }
 0x151   : > { %s808_s19 = smov %s729_s25  ;;  %s809_s20 = smov %s720_s22 }
 0x152   :  { %14 = sbr.rel (!%p12_p9) target bundleno = 2 (0x2), region = 98 }

</bundles_post_ra>
